<compile_context>
chip_gen: v7x
topology: tpu7x:2x2x1
jax: 0.10.0
libtpu: 0.0.40
codegen_flags: <defaults>
</compile_context>

<pallas_src>
import functools

import jax
import jax.numpy as jnp
from jax import lax
from jax.experimental import pallas as pl
from jax.experimental.pallas import tpu as pltpu


def _dice_loss_kernel(pred_ref, tgt_ref, out_ref, m_sl, r_sl, inter_acc, sq_acc,
                      *, n_channels, smooth, needs_mask, valid_rows_last):
    """One (batch, spatial-tile) grid step.

    pred_ref, tgt_ref: (1, C, TILE_R, L) blocks in their native dtypes.
    out_ref:           (1, C, 1) per-(batch, channel) dice loss, written on the
                       last spatial step only.
    m_sl, r_sl:        (TILE_R, L) f32 scratch slabs (per-pixel channel max and
                       reciprocal of the softmax denominator).
    inter_acc, sq_acc: (C, L) f32 lane-dense running partial sums, persistent
                       across the spatial grid axis.
    """
    step = pl.program_id(1)
    last = pl.num_programs(1) - 1

    @pl.when(step == 0)
    def _init():
        inter_acc[...] = jnp.zeros_like(inter_acc)
        sq_acc[...] = jnp.zeros_like(sq_acc)

    # ---- Pass A: per-pixel max over channels (stable softmax). -------------
    # Channel loops are static Python unrolls (C is small & static); each
    # iteration's temporaries die at the ref store, keeping live VMEM bounded
    # to a few (TILE_R, L) slabs instead of full (C, TILE_R, L) copies.
    m_sl[...] = pred_ref[0, 0].astype(jnp.float32)
    for c in range(1, n_channels):
        m_sl[...] = jnp.maximum(m_sl[...], pred_ref[0, c].astype(jnp.float32))

    # ---- Pass B: per-pixel sum of exp(x - max) over channels. ---------------
    r_sl[...] = jnp.exp(pred_ref[0, 0].astype(jnp.float32) - m_sl[...])
    for c in range(1, n_channels):
        r_sl[...] += jnp.exp(pred_ref[0, c].astype(jnp.float32) - m_sl[...])

    # Reciprocal of the denominator on the EUP (approx) + one Newton-Raphson
    # refinement (2 mul + 1 sub), so the per-pixel divide never hits the VALU
    # slot while accuracy stays at ~f32 level (denominator is in [1, C]).
    d = r_sl[...]
    r0 = pl.reciprocal(d, approx=True)
    r_sl[...] = r0 * (2.0 - d * r0)

    if needs_mask:
        # The last spatial tile may run past the array: mask invalid rows out
        # of the accumulated sums (jnp.where selects, so garbage never leaks).
        rows = lax.broadcasted_iota(jnp.int32, m_sl.shape, 0)
        n_valid = jnp.where(step == last, valid_rows_last, m_sl.shape[0])
        row_ok = rows < n_valid

    # ---- Pass C: normalize, multiply by target, accumulate partial sums. ----
    for c in range(n_channels):
        x = pred_ref[0, c].astype(jnp.float32)
        t = tgt_ref[0, c].astype(jnp.float32)
        p = jnp.exp(x - m_sl[...]) * r_sl[...]          # softmax prob, channel c
        inter = p * t
        sq = p * p + t * t
        if needs_mask:
            inter = jnp.where(row_ok, inter, 0.0)
            sq = jnp.where(row_ok, sq, 0.0)
        # Sublane-only reductions; the cross-lane (XLU) reduction is deferred
        # to finalize so the per-step accumulators stay lane-dense.
        inter_acc[c:c + 1, :] += jnp.sum(inter, axis=0, keepdims=True)
        sq_acc[c:c + 1, :] += jnp.sum(sq, axis=0, keepdims=True)

    @pl.when(step == last)
    def _finalize():
        inter = jnp.sum(inter_acc[...], axis=-1, keepdims=True)   # (C, 1)
        sq = jnp.sum(sq_acc[...], axis=-1, keepdims=True)         # (C, 1)
        # BinaryDiceLoss per (n, c): 1 - (2*inter + smooth) / (sum(p^2+t^2) + smooth)
        loss_c = 1.0 - (2.0 * inter + smooth) / (sq + smooth)
        out_ref[...] = loss_c[None].astype(out_ref.dtype)          # (1, C, 1)


def _vmem_capacity_bytes():
    try:
        return int(pltpu.get_tpu_info().vmem_capacity_bytes)
    except Exception:
        return 64 << 20                  # conservative (v7x-sized) fallback


def _row_multiple(itemsizes):
    # Sub-32-bit dtypes pack 4/itemsize rows per sublane, so block row counts
    # should be multiples of 8 * packing (unless they span the full extent).
    return max(8 * max(1, 4 // int(sz)) for sz in itemsizes)


def _choose_tile_rows(R, L, C, itemsizes, vmem_cap):
    """Pick the spatial tile height (rows of the (R, L) spatial layout)."""
    row_mult = _row_multiple(itemsizes)
    # Bytes that scale with tile rows: 2 inputs x 2 pipeline buffers in their
    # native dtypes + ~8 f32 slabs of in-kernel scratch / temporaries.
    per_row = L * (2 * C * sum(int(sz) for sz in itemsizes) + 8 * 4)
    max_rows = int(vmem_cap * 0.7) // per_row
    # Cap each input block at ~8 MiB: beyond that the per-step overhead is
    # already fully amortized and extra VMEM buys nothing.
    max_rows = min(max_rows,
                   (8 << 20) // (C * L * max(int(sz) for sz in itemsizes)))
    if max_rows >= R:
        return R, False                   # single spatial step (full extent)
    max_rows = max(row_mult, (max_rows // row_mult) * row_mult)
    # Prefer an exact divisor of R (no in-kernel row masking) as long as it is
    # at least half of the budgeted tile.
    tr = max_rows
    while tr >= row_mult and 2 * tr >= max_rows:
        if R % tr == 0:
            return tr, False
        tr -= row_mult
    return max_rows, True                 # cdiv grid + in-kernel row mask


def dice_loss_pallas(predict, target, smooth: float = 1e-6, tile_rows=None):
    """DiceLoss.forward (apply_softmax=True, weight=None, ignore_index=None).

    predict, target: (N, C, H, W); any float dtypes (upcast per-slab in-kernel).
    Supplying `target` as a bf16 one-hot halves its HBM traffic exactly.
    """
    assert predict.shape == target.shape, (predict.shape, target.shape)
    N, C, H, W = predict.shape
    S = H * W

    # Lane-dense spatial layout: (rows, 128) when possible, else (H, W).
    if S % 128 == 0:
        R, L = S // 128, 128
    else:
        R, L = H, W
    pred = predict.reshape(N, C, R, L)     # free reshape (contiguous)
    tgt = target.reshape(N, C, R, L)

    itemsizes = (jnp.dtype(pred.dtype).itemsize, jnp.dtype(tgt.dtype).itemsize)
    vmem_cap = _vmem_capacity_bytes()
    if tile_rows is None:
        tile_r, needs_mask = _choose_tile_rows(R, L, C, itemsizes, vmem_cap)
    else:
        tile_r = int(tile_rows)
        row_mult = _row_multiple(itemsizes)
        assert tile_r == R or tile_r % row_mult == 0, (tile_r, row_mult)
        needs_mask = (R % tile_r) != 0

    num_s = -(-R // tile_r)
    valid_rows_last = R - (num_s - 1) * tile_r
    grid = (N, num_s)

    in_spec = pl.BlockSpec((1, C, tile_r, L), lambda n, s: (n, 0, s, 0))
    out_spec = pl.BlockSpec((1, C, 1), lambda n, s: (n, 0, 0))

    kernel = functools.partial(
        _dice_loss_kernel, n_channels=C, smooth=float(smooth),
        needs_mask=needs_mask, valid_rows_last=int(valid_rows_last))

    out_nc = pl.pallas_call(
        kernel,
        out_shape=jax.ShapeDtypeStruct((N, C, 1), jnp.float32),
        grid_spec=pltpu.PrefetchScalarGridSpec(
            num_scalar_prefetch=0,
            grid=grid,
            in_specs=[in_spec, in_spec],
            out_specs=out_spec,
            scratch_shapes=[
                pltpu.VMEM((tile_r, L), jnp.float32),   # per-pixel channel max
                pltpu.VMEM((tile_r, L), jnp.float32),   # 1 / softmax denominator
                pltpu.VMEM((C, L), jnp.float32),        # running intersection
                pltpu.VMEM((C, L), jnp.float32),        # running sum(p^2 + t^2)
            ],
        ),
        compiler_params=pltpu.CompilerParams(
            # Batch axis is megacore-parallel (each core owns its own output
            # rows + scratch); the spatial reduction axis stays "arbitrary".
            # (Possible v7x extension: 2-way spatial core split when N == 1.)
            dimension_semantics=("parallel", "arbitrary"),
            vmem_limit_bytes=int(vmem_cap * 0.85),
        ),
    )(pred, tgt)

    # Epilogue: mean over batch, sum over channels, / C  ==  sum / (N * C).
    return jnp.sum(out_nc) / (N * C)


def dice_loss_ref(predict, target, smooth: float = 1e-6):
    """Pure-JAX reference matching the PyTorch DiceLoss forward semantics."""
    N, C = predict.shape[:2]
    p = jax.nn.softmax(predict.astype(jnp.float32), axis=1).reshape(N, C, -1)
    t = target.astype(jnp.float32).reshape(N, C, -1)
    num = 2.0 * jnp.sum(p * t, axis=-1) + smooth
    den = jnp.sum(p * p + t * t, axis=-1) + smooth
    loss_nc = 1.0 - num / den
    return jnp.sum(jnp.mean(loss_nc, axis=0)) / C


if __name__ == "__main__":
    key = jax.random.PRNGKey(0)
    keys = jax.random.split(key, 6)

    # Test 1: small module-consistent shape; lane-dense fast path, single tile.
    N, C, H, W = 2, 4, 16, 16
    predict = jax.random.normal(keys[0], (N, C, H, W), dtype=jnp.float32)
    labels = jax.random.randint(keys[1], (N, H, W), 0, C)
    target = jax.nn.one_hot(labels, C, axis=1, dtype=jnp.float32)

    loss = jax.block_until_ready(dice_loss_pallas(predict, target))
    ref = dice_loss_ref(predict, target)
    assert jnp.allclose(loss, ref, atol=1e-5, rtol=1e-5), (loss, ref)

    # Test 2: awkward spatial shape (H*W % 128 != 0) -> (H, W) fallback layout,
    # forced small tile so the multi-step + partial-last-tile mask path runs.
    N2, C2, H2, W2 = 2, 3, 40, 24
    predict2 = jax.random.normal(keys[2], (N2, C2, H2, W2), dtype=jnp.float32)
    labels2 = jax.random.randint(keys[3], (N2, H2, W2), 0, C2)
    target2 = jax.nn.one_hot(labels2, C2, axis=1, dtype=jnp.float32)

    loss2 = jax.block_until_ready(dice_loss_pallas(predict2, target2, tile_rows=16))
    ref2 = dice_loss_ref(predict2, target2)
    assert jnp.allclose(loss2, ref2, atol=1e-5, rtol=1e-5), (loss2, ref2)

    # Test 3: bf16 one-hot target (half the target HBM traffic) + multi-step
    # spatial accumulation with evenly dividing tiles (no masking path).
    N3, C3, H3, W3 = 2, 4, 128, 128
    predict3 = jax.random.normal(keys[4], (N3, C3, H3, W3), dtype=jnp.float32)
    labels3 = jax.random.randint(keys[5], (N3, H3, W3), 0, C3)
    target3 = jax.nn.one_hot(labels3, C3, axis=1, dtype=jnp.bfloat16)

    loss3 = jax.block_until_ready(dice_loss_pallas(predict3, target3, tile_rows=32))
    ref3 = dice_loss_ref(predict3, target3)
    assert jnp.allclose(loss3, ref3, atol=1e-5, rtol=1e-5), (loss3, ref3)

    print("KERNEL_OK")
</pallas_src>

<mosaic_0001>
module attributes {stable_mosaic.version = 11 : i64} {
  func.func @_dice_loss_kernel(%arg0: i32, %arg1: i32, %arg2: memref<1x4x2x128xf32, #tpu.memory_space<vmem>>, %arg3: memref<1x4x2x128xf32, #tpu.memory_space<vmem>>, %arg4: memref<1x4x1xf32, #tpu.memory_space<vmem>>, %arg5: memref<2x128xf32, #tpu.memory_space<vmem>>, %arg6: memref<2x128xf32, #tpu.memory_space<vmem>>, %arg7: memref<4x128xf32, #tpu.memory_space<vmem>>, %arg8: memref<4x128xf32, #tpu.memory_space<vmem>>) attributes {dimension_semantics = [#tpu.dimension_semantics<parallel>, #tpu.dimension_semantics<arbitrary>], iteration_bounds = array<i64: 2, 1>, scalar_prefetch = 0 : i64, scratch_operands = 4 : i64, tpu.core_type = #tpu.core_type<tc>, window_params = [{transform_indices = @transform_0, window_bounds = array<i64: 1, 4, 2, 128>}, {transform_indices = @transform_1, window_bounds = array<i64: 1, 4, 2, 128>}, {transform_indices = @transform_2, window_bounds = array<i64: 1, 4, 1>}]} {
    %c0_i32 = arith.constant 0 : i32
    %0 = arith.cmpi eq, %arg1, %c0_i32 : i32
    %1 = arith.extui %0 : i1 to i32
    %c0_i32_0 = arith.constant 0 : i32
    %2 = arith.cmpi ne, %1, %c0_i32_0 : i32
    scf.if %2 {
      %cst_159 = arith.constant 0.000000e+00 : f32
      %153 = vector.broadcast %cst_159 : f32 to vector<4x128xf32>
      %c0_160 = arith.constant 0 : index
      %c0_161 = arith.constant 0 : index
      %154 = vector.load %arg7[%c0_160, %c0_161] : memref<4x128xf32, #tpu.memory_space<vmem>>, vector<4x128xf32>
      tpu.vector_store %arg7[%c0_160, %c0_161], %153 {strides = array<i32>} : memref<4x128xf32, #tpu.memory_space<vmem>>, vector<4x128xf32>,
      %cst_162 = arith.constant 0.000000e+00 : f32
      %155 = vector.broadcast %cst_162 : f32 to vector<4x128xf32>
      %c0_163 = arith.constant 0 : index
      %c0_164 = arith.constant 0 : index
      %156 = vector.load %arg8[%c0_163, %c0_164] : memref<4x128xf32, #tpu.memory_space<vmem>>, vector<4x128xf32>
      tpu.vector_store %arg8[%c0_163, %c0_164], %155 {strides = array<i32>} : memref<4x128xf32, #tpu.memory_space<vmem>>, vector<4x128xf32>,
    } else {
    }
    %c0 = arith.constant 0 : index
    %c0_1 = arith.constant 0 : index
    %c0_2 = arith.constant 0 : index
    %c0_3 = arith.constant 0 : index
    %3 = vector.load %arg2[%c0, %c0_1, %c0_2, %c0_3] : memref<1x4x2x128xf32, #tpu.memory_space<vmem>>, vector<1x1x2x128xf32>
    %4 = vector.shape_cast %3 : vector<1x1x2x128xf32> to vector<2x128xf32>
    %c0_4 = arith.constant 0 : index
    %c0_5 = arith.constant 0 : index
    %5 = vector.load %arg5[%c0_4, %c0_5] : memref<2x128xf32, #tpu.memory_space<vmem>>, vector<2x128xf32>
    tpu.vector_store %arg5[%c0_4, %c0_5], %4 {strides = array<i32>} : memref<2x128xf32, #tpu.memory_space<vmem>>, vector<2x128xf32>,
    %c0_6 = arith.constant 0 : index
    %c0_7 = arith.constant 0 : index
    %6 = vector.load %arg5[%c0_6, %c0_7] : memref<2x128xf32, #tpu.memory_space<vmem>>, vector<2x128xf32>
    %c0_8 = arith.constant 0 : index
    %c1 = arith.constant 1 : index
    %c0_9 = arith.constant 0 : index
    %c0_10 = arith.constant 0 : index
    %7 = vector.load %arg2[%c0_8, %c1, %c0_9, %c0_10] : memref<1x4x2x128xf32, #tpu.memory_space<vmem>>, vector<1x1x2x128xf32>
    %8 = vector.shape_cast %7 : vector<1x1x2x128xf32> to vector<2x128xf32>
    %9 = arith.maximumf %6, %8 : vector<2x128xf32>
    %c0_11 = arith.constant 0 : index
    %c0_12 = arith.constant 0 : index
    %10 = vector.load %arg5[%c0_11, %c0_12] : memref<2x128xf32, #tpu.memory_space<vmem>>, vector<2x128xf32>
    tpu.vector_store %arg5[%c0_11, %c0_12], %9 {strides = array<i32>} : memref<2x128xf32, #tpu.memory_space<vmem>>, vector<2x128xf32>,
    %c0_13 = arith.constant 0 : index
    %c0_14 = arith.constant 0 : index
    %11 = vector.load %arg5[%c0_13, %c0_14] : memref<2x128xf32, #tpu.memory_space<vmem>>, vector<2x128xf32>
    %c0_15 = arith.constant 0 : index
    %c2 = arith.constant 2 : index
    %c0_16 = arith.constant 0 : index
    %c0_17 = arith.constant 0 : index
    %12 = vector.load %arg2[%c0_15, %c2, %c0_16, %c0_17] : memref<1x4x2x128xf32, #tpu.memory_space<vmem>>, vector<1x1x2x128xf32>
    %13 = vector.shape_cast %12 : vector<1x1x2x128xf32> to vector<2x128xf32>
    %14 = arith.maximumf %11, %13 : vector<2x128xf32>
    %c0_18 = arith.constant 0 : index
    %c0_19 = arith.constant 0 : index
    %15 = vector.load %arg5[%c0_18, %c0_19] : memref<2x128xf32, #tpu.memory_space<vmem>>, vector<2x128xf32>
    tpu.vector_store %arg5[%c0_18, %c0_19], %14 {strides = array<i32>} : memref<2x128xf32, #tpu.memory_space<vmem>>, vector<2x128xf32>,
    %c0_20 = arith.constant 0 : index
    %c0_21 = arith.constant 0 : index
    %16 = vector.load %arg5[%c0_20, %c0_21] : memref<2x128xf32, #tpu.memory_space<vmem>>, vector<2x128xf32>
    %c0_22 = arith.constant 0 : index
    %c3 = arith.constant 3 : index
    %c0_23 = arith.constant 0 : index
    %c0_24 = arith.constant 0 : index
    %17 = vector.load %arg2[%c0_22, %c3, %c0_23, %c0_24] : memref<1x4x2x128xf32, #tpu.memory_space<vmem>>, vector<1x1x2x128xf32>
    %18 = vector.shape_cast %17 : vector<1x1x2x128xf32> to vector<2x128xf32>
    %19 = arith.maximumf %16, %18 : vector<2x128xf32>
    %c0_25 = arith.constant 0 : index
    %c0_26 = arith.constant 0 : index
    %20 = vector.load %arg5[%c0_25, %c0_26] : memref<2x128xf32, #tpu.memory_space<vmem>>, vector<2x128xf32>
    tpu.vector_store %arg5[%c0_25, %c0_26], %19 {strides = array<i32>} : memref<2x128xf32, #tpu.memory_space<vmem>>, vector<2x128xf32>,
    %c0_27 = arith.constant 0 : index
    %c0_28 = arith.constant 0 : index
    %c0_29 = arith.constant 0 : index
    %c0_30 = arith.constant 0 : index
    %21 = vector.load %arg2[%c0_27, %c0_28, %c0_29, %c0_30] : memref<1x4x2x128xf32, #tpu.memory_space<vmem>>, vector<1x1x2x128xf32>
    %22 = vector.shape_cast %21 : vector<1x1x2x128xf32> to vector<2x128xf32>
    %c0_31 = arith.constant 0 : index
    %c0_32 = arith.constant 0 : index
    %23 = vector.load %arg5[%c0_31, %c0_32] : memref<2x128xf32, #tpu.memory_space<vmem>>, vector<2x128xf32>
    %24 = arith.subf %22, %23 : vector<2x128xf32>
    %25 = math.exp %24 : vector<2x128xf32>
    %c0_33 = arith.constant 0 : index
    %c0_34 = arith.constant 0 : index
    %26 = vector.load %arg6[%c0_33, %c0_34] : memref<2x128xf32, #tpu.memory_space<vmem>>, vector<2x128xf32>
    tpu.vector_store %arg6[%c0_33, %c0_34], %25 {strides = array<i32>} : memref<2x128xf32, #tpu.memory_space<vmem>>, vector<2x128xf32>,
    %c0_35 = arith.constant 0 : index
    %c0_36 = arith.constant 0 : index
    %27 = vector.load %arg6[%c0_35, %c0_36] : memref<2x128xf32, #tpu.memory_space<vmem>>, vector<2x128xf32>
    %c0_37 = arith.constant 0 : index
    %c1_38 = arith.constant 1 : index
    %c0_39 = arith.constant 0 : index
    %c0_40 = arith.constant 0 : index
    %28 = vector.load %arg2[%c0_37, %c1_38, %c0_39, %c0_40] : memref<1x4x2x128xf32, #tpu.memory_space<vmem>>, vector<1x1x2x128xf32>
    %29 = vector.shape_cast %28 : vector<1x1x2x128xf32> to vector<2x128xf32>
    %c0_41 = arith.constant 0 : index
    %c0_42 = arith.constant 0 : index
    %30 = vector.load %arg5[%c0_41, %c0_42] : memref<2x128xf32, #tpu.memory_space<vmem>>, vector<2x128xf32>
    %31 = arith.subf %29, %30 : vector<2x128xf32>
    %32 = math.exp %31 : vector<2x128xf32>
    %33 = arith.addf %27, %32 : vector<2x128xf32>
    %c0_43 = arith.constant 0 : index
    %c0_44 = arith.constant 0 : index
    %34 = vector.load %arg6[%c0_43, %c0_44] : memref<2x128xf32, #tpu.memory_space<vmem>>, vector<2x128xf32>
    tpu.vector_store %arg6[%c0_43, %c0_44], %33 {strides = array<i32>} : memref<2x128xf32, #tpu.memory_space<vmem>>, vector<2x128xf32>,
    %c0_45 = arith.constant 0 : index
    %c0_46 = arith.constant 0 : index
    %35 = vector.load %arg6[%c0_45, %c0_46] : memref<2x128xf32, #tpu.memory_space<vmem>>, vector<2x128xf32>
    %c0_47 = arith.constant 0 : index
    %c2_48 = arith.constant 2 : index
    %c0_49 = arith.constant 0 : index
    %c0_50 = arith.constant 0 : index
    %36 = vector.load %arg2[%c0_47, %c2_48, %c0_49, %c0_50] : memref<1x4x2x128xf32, #tpu.memory_space<vmem>>, vector<1x1x2x128xf32>
    %37 = vector.shape_cast %36 : vector<1x1x2x128xf32> to vector<2x128xf32>
    %c0_51 = arith.constant 0 : index
    %c0_52 = arith.constant 0 : index
    %38 = vector.load %arg5[%c0_51, %c0_52] : memref<2x128xf32, #tpu.memory_space<vmem>>, vector<2x128xf32>
    %39 = arith.subf %37, %38 : vector<2x128xf32>
    %40 = math.exp %39 : vector<2x128xf32>
    %41 = arith.addf %35, %40 : vector<2x128xf32>
    %c0_53 = arith.constant 0 : index
    %c0_54 = arith.constant 0 : index
    %42 = vector.load %arg6[%c0_53, %c0_54] : memref<2x128xf32, #tpu.memory_space<vmem>>, vector<2x128xf32>
    tpu.vector_store %arg6[%c0_53, %c0_54], %41 {strides = array<i32>} : memref<2x128xf32, #tpu.memory_space<vmem>>, vector<2x128xf32>,
    %c0_55 = arith.constant 0 : index
    %c0_56 = arith.constant 0 : index
    %43 = vector.load %arg6[%c0_55, %c0_56] : memref<2x128xf32, #tpu.memory_space<vmem>>, vector<2x128xf32>
    %c0_57 = arith.constant 0 : index
    %c3_58 = arith.constant 3 : index
    %c0_59 = arith.constant 0 : index
    %c0_60 = arith.constant 0 : index
    %44 = vector.load %arg2[%c0_57, %c3_58, %c0_59, %c0_60] : memref<1x4x2x128xf32, #tpu.memory_space<vmem>>, vector<1x1x2x128xf32>
    %45 = vector.shape_cast %44 : vector<1x1x2x128xf32> to vector<2x128xf32>
    %c0_61 = arith.constant 0 : index
    %c0_62 = arith.constant 0 : index
    %46 = vector.load %arg5[%c0_61, %c0_62] : memref<2x128xf32, #tpu.memory_space<vmem>>, vector<2x128xf32>
    %47 = arith.subf %45, %46 : vector<2x128xf32>
    %48 = math.exp %47 : vector<2x128xf32>
    %49 = arith.addf %43, %48 : vector<2x128xf32>
    %c0_63 = arith.constant 0 : index
    %c0_64 = arith.constant 0 : index
    %50 = vector.load %arg6[%c0_63, %c0_64] : memref<2x128xf32, #tpu.memory_space<vmem>>, vector<2x128xf32>
    tpu.vector_store %arg6[%c0_63, %c0_64], %49 {strides = array<i32>} : memref<2x128xf32, #tpu.memory_space<vmem>>, vector<2x128xf32>,
    %c0_65 = arith.constant 0 : index
    %c0_66 = arith.constant 0 : index
    %51 = vector.load %arg6[%c0_65, %c0_66] : memref<2x128xf32, #tpu.memory_space<vmem>>, vector<2x128xf32>
    %52 = tpu.reciprocal %51 {approx = true} : vector<2x128xf32> -> vector<2x128xf32>
    %53 = arith.mulf %51, %52 : vector<2x128xf32>
    %cst = arith.constant 2.000000e+00 : f32
    %54 = vector.broadcast %cst : f32 to vector<2x128xf32>
    %55 = arith.subf %54, %53 : vector<2x128xf32>
    %56 = arith.mulf %52, %55 : vector<2x128xf32>
    %c0_67 = arith.constant 0 : index
    %c0_68 = arith.constant 0 : index
    %57 = vector.load %arg6[%c0_67, %c0_68] : memref<2x128xf32, #tpu.memory_space<vmem>>, vector<2x128xf32>
    tpu.vector_store %arg6[%c0_67, %c0_68], %56 {strides = array<i32>} : memref<2x128xf32, #tpu.memory_space<vmem>>, vector<2x128xf32>,
    %c0_69 = arith.constant 0 : index
    %c0_70 = arith.constant 0 : index
    %c0_71 = arith.constant 0 : index
    %c0_72 = arith.constant 0 : index
    %58 = vector.load %arg2[%c0_69, %c0_70, %c0_71, %c0_72] : memref<1x4x2x128xf32, #tpu.memory_space<vmem>>, vector<1x1x2x128xf32>
    %59 = vector.shape_cast %58 : vector<1x1x2x128xf32> to vector<2x128xf32>
    %c0_73 = arith.constant 0 : index
    %c0_74 = arith.constant 0 : index
    %c0_75 = arith.constant 0 : index
    %c0_76 = arith.constant 0 : index
    %60 = vector.load %arg3[%c0_73, %c0_74, %c0_75, %c0_76] : memref<1x4x2x128xf32, #tpu.memory_space<vmem>>, vector<1x1x2x128xf32>
    %61 = vector.shape_cast %60 : vector<1x1x2x128xf32> to vector<2x128xf32>
    %c0_77 = arith.constant 0 : index
    %c0_78 = arith.constant 0 : index
    %62 = vector.load %arg5[%c0_77, %c0_78] : memref<2x128xf32, #tpu.memory_space<vmem>>, vector<2x128xf32>
    %63 = arith.subf %59, %62 : vector<2x128xf32>
    %64 = math.exp %63 : vector<2x128xf32>
    %c0_79 = arith.constant 0 : index
    %c0_80 = arith.constant 0 : index
    %65 = vector.load %arg6[%c0_79, %c0_80] : memref<2x128xf32, #tpu.memory_space<vmem>>, vector<2x128xf32>
    %66 = arith.mulf %64, %65 : vector<2x128xf32>
    %67 = arith.mulf %66, %61 : vector<2x128xf32>
    %68 = arith.mulf %66, %66 : vector<2x128xf32>
    %69 = arith.mulf %61, %61 : vector<2x128xf32>
    %70 = arith.addf %68, %69 : vector<2x128xf32>
    %c0_81 = arith.constant 0 : index
    %c0_82 = arith.constant 0 : index
    %71 = vector.load %arg7[%c0_81, %c0_82] : memref<4x128xf32, #tpu.memory_space<vmem>>, vector<1x128xf32>
    %cst_83 = arith.constant dense<0.000000e+00> : vector<128xf32>
    %72 = vector.multi_reduction <add>, %67, %cst_83 [0] : vector<2x128xf32> to vector<128xf32>
    %73 = vector.shape_cast %72 : vector<128xf32> to vector<1x128xf32>
    %74 = arith.addf %71, %73 : vector<1x128xf32>
    %c0_84 = arith.constant 0 : index
    %c0_85 = arith.constant 0 : index
    %75 = vector.load %arg7[%c0_84, %c0_85] : memref<4x128xf32, #tpu.memory_space<vmem>>, vector<1x128xf32>
    tpu.vector_store %arg7[%c0_84, %c0_85], %74 {strides = array<i32>} : memref<4x128xf32, #tpu.memory_space<vmem>>, vector<1x128xf32>,
    %c0_86 = arith.constant 0 : index
    %c0_87 = arith.constant 0 : index
    %76 = vector.load %arg8[%c0_86, %c0_87] : memref<4x128xf32, #tpu.memory_space<vmem>>, vector<1x128xf32>
    %cst_88 = arith.constant dense<0.000000e+00> : vector<128xf32>
    %77 = vector.multi_reduction <add>, %70, %cst_88 [0] : vector<2x128xf32> to vector<128xf32>
    %78 = vector.shape_cast %77 : vector<128xf32> to vector<1x128xf32>
    %79 = arith.addf %76, %78 : vector<1x128xf32>
    %c0_89 = arith.constant 0 : index
    %c0_90 = arith.constant 0 : index
    %80 = vector.load %arg8[%c0_89, %c0_90] : memref<4x128xf32, #tpu.memory_space<vmem>>, vector<1x128xf32>
    tpu.vector_store %arg8[%c0_89, %c0_90], %79 {strides = array<i32>} : memref<4x128xf32, #tpu.memory_space<vmem>>, vector<1x128xf32>,
    %c0_91 = arith.constant 0 : index
    %c1_92 = arith.constant 1 : index
    %c0_93 = arith.constant 0 : index
    %c0_94 = arith.constant 0 : index
    %81 = vector.load %arg2[%c0_91, %c1_92, %c0_93, %c0_94] : memref<1x4x2x128xf32, #tpu.memory_space<vmem>>, vector<1x1x2x128xf32>
    %82 = vector.shape_cast %81 : vector<1x1x2x128xf32> to vector<2x128xf32>
    %c0_95 = arith.constant 0 : index
    %c1_96 = arith.constant 1 : index
    %c0_97 = arith.constant 0 : index
    %c0_98 = arith.constant 0 : index
    %83 = vector.load %arg3[%c0_95, %c1_96, %c0_97, %c0_98] : memref<1x4x2x128xf32, #tpu.memory_space<vmem>>, vector<1x1x2x128xf32>
    %84 = vector.shape_cast %83 : vector<1x1x2x128xf32> to vector<2x128xf32>
    %c0_99 = arith.constant 0 : index
    %c0_100 = arith.constant 0 : index
    %85 = vector.load %arg5[%c0_99, %c0_100] : memref<2x128xf32, #tpu.memory_space<vmem>>, vector<2x128xf32>
    %86 = arith.subf %82, %85 : vector<2x128xf32>
    %87 = math.exp %86 : vector<2x128xf32>
    %c0_101 = arith.constant 0 : index
    %c0_102 = arith.constant 0 : index
    %88 = vector.load %arg6[%c0_101, %c0_102] : memref<2x128xf32, #tpu.memory_space<vmem>>, vector<2x128xf32>
    %89 = arith.mulf %87, %88 : vector<2x128xf32>
    %90 = arith.mulf %89, %84 : vector<2x128xf32>
    %91 = arith.mulf %89, %89 : vector<2x128xf32>
    %92 = arith.mulf %84, %84 : vector<2x128xf32>
    %93 = arith.addf %91, %92 : vector<2x128xf32>
    %c1_103 = arith.constant 1 : index
    %c0_104 = arith.constant 0 : index
    %94 = vector.load %arg7[%c1_103, %c0_104] : memref<4x128xf32, #tpu.memory_space<vmem>>, vector<1x128xf32>
    %cst_105 = arith.constant dense<0.000000e+00> : vector<128xf32>
    %95 = vector.multi_reduction <add>, %90, %cst_105 [0] : vector<2x128xf32> to vector<128xf32>
    %96 = vector.shape_cast %95 : vector<128xf32> to vector<1x128xf32>
    %97 = arith.addf %94, %96 : vector<1x128xf32>
    %c1_106 = arith.constant 1 : index
    %c0_107 = arith.constant 0 : index
    %98 = vector.load %arg7[%c1_106, %c0_107] : memref<4x128xf32, #tpu.memory_space<vmem>>, vector<1x128xf32>
    tpu.vector_store %arg7[%c1_106, %c0_107], %97 {strides = array<i32>} : memref<4x128xf32, #tpu.memory_space<vmem>>, vector<1x128xf32>,
    %c1_108 = arith.constant 1 : index
    %c0_109 = arith.constant 0 : index
    %99 = vector.load %arg8[%c1_108, %c0_109] : memref<4x128xf32, #tpu.memory_space<vmem>>, vector<1x128xf32>
    %cst_110 = arith.constant dense<0.000000e+00> : vector<128xf32>
    %100 = vector.multi_reduction <add>, %93, %cst_110 [0] : vector<2x128xf32> to vector<128xf32>
    %101 = vector.shape_cast %100 : vector<128xf32> to vector<1x128xf32>
    %102 = arith.addf %99, %101 : vector<1x128xf32>
    %c1_111 = arith.constant 1 : index
    %c0_112 = arith.constant 0 : index
    %103 = vector.load %arg8[%c1_111, %c0_112] : memref<4x128xf32, #tpu.memory_space<vmem>>, vector<1x128xf32>
    tpu.vector_store %arg8[%c1_111, %c0_112], %102 {strides = array<i32>} : memref<4x128xf32, #tpu.memory_space<vmem>>, vector<1x128xf32>,
    %c0_113 = arith.constant 0 : index
    %c2_114 = arith.constant 2 : index
    %c0_115 = arith.constant 0 : index
    %c0_116 = arith.constant 0 : index
    %104 = vector.load %arg2[%c0_113, %c2_114, %c0_115, %c0_116] : memref<1x4x2x128xf32, #tpu.memory_space<vmem>>, vector<1x1x2x128xf32>
    %105 = vector.shape_cast %104 : vector<1x1x2x128xf32> to vector<2x128xf32>
    %c0_117 = arith.constant 0 : index
    %c2_118 = arith.constant 2 : index
    %c0_119 = arith.constant 0 : index
    %c0_120 = arith.constant 0 : index
    %106 = vector.load %arg3[%c0_117, %c2_118, %c0_119, %c0_120] : memref<1x4x2x128xf32, #tpu.memory_space<vmem>>, vector<1x1x2x128xf32>
    %107 = vector.shape_cast %106 : vector<1x1x2x128xf32> to vector<2x128xf32>
    %c0_121 = arith.constant 0 : index
    %c0_122 = arith.constant 0 : index
    %108 = vector.load %arg5[%c0_121, %c0_122] : memref<2x128xf32, #tpu.memory_space<vmem>>, vector<2x128xf32>
    %109 = arith.subf %105, %108 : vector<2x128xf32>
    %110 = math.exp %109 : vector<2x128xf32>
    %c0_123 = arith.constant 0 : index
    %c0_124 = arith.constant 0 : index
    %111 = vector.load %arg6[%c0_123, %c0_124] : memref<2x128xf32, #tpu.memory_space<vmem>>, vector<2x128xf32>
    %112 = arith.mulf %110, %111 : vector<2x128xf32>
    %113 = arith.mulf %112, %107 : vector<2x128xf32>
    %114 = arith.mulf %112, %112 : vector<2x128xf32>
    %115 = arith.mulf %107, %107 : vector<2x128xf32>
    %116 = arith.addf %114, %115 : vector<2x128xf32>
    %c2_125 = arith.constant 2 : index
    %c0_126 = arith.constant 0 : index
    %117 = vector.load %arg7[%c2_125, %c0_126] : memref<4x128xf32, #tpu.memory_space<vmem>>, vector<1x128xf32>
    %cst_127 = arith.constant dense<0.000000e+00> : vector<128xf32>
    %118 = vector.multi_reduction <add>, %113, %cst_127 [0] : vector<2x128xf32> to vector<128xf32>
    %119 = vector.shape_cast %118 : vector<128xf32> to vector<1x128xf32>
    %120 = arith.addf %117, %119 : vector<1x128xf32>
    %c2_128 = arith.constant 2 : index
    %c0_129 = arith.constant 0 : index
    %121 = vector.load %arg7[%c2_128, %c0_129] : memref<4x128xf32, #tpu.memory_space<vmem>>, vector<1x128xf32>
    tpu.vector_store %arg7[%c2_128, %c0_129], %120 {strides = array<i32>} : memref<4x128xf32, #tpu.memory_space<vmem>>, vector<1x128xf32>,
    %c2_130 = arith.constant 2 : index
    %c0_131 = arith.constant 0 : index
    %122 = vector.load %arg8[%c2_130, %c0_131] : memref<4x128xf32, #tpu.memory_space<vmem>>, vector<1x128xf32>
    %cst_132 = arith.constant dense<0.000000e+00> : vector<128xf32>
    %123 = vector.multi_reduction <add>, %116, %cst_132 [0] : vector<2x128xf32> to vector<128xf32>
    %124 = vector.shape_cast %123 : vector<128xf32> to vector<1x128xf32>
    %125 = arith.addf %122, %124 : vector<1x128xf32>
    %c2_133 = arith.constant 2 : index
    %c0_134 = arith.constant 0 : index
    %126 = vector.load %arg8[%c2_133, %c0_134] : memref<4x128xf32, #tpu.memory_space<vmem>>, vector<1x128xf32>
    tpu.vector_store %arg8[%c2_133, %c0_134], %125 {strides = array<i32>} : memref<4x128xf32, #tpu.memory_space<vmem>>, vector<1x128xf32>,
    %c0_135 = arith.constant 0 : index
    %c3_136 = arith.constant 3 : index
    %c0_137 = arith.constant 0 : index
    %c0_138 = arith.constant 0 : index
    %127 = vector.load %arg2[%c0_135, %c3_136, %c0_137, %c0_138] : memref<1x4x2x128xf32, #tpu.memory_space<vmem>>, vector<1x1x2x128xf32>
    %128 = vector.shape_cast %127 : vector<1x1x2x128xf32> to vector<2x128xf32>
    %c0_139 = arith.constant 0 : index
    %c3_140 = arith.constant 3 : index
    %c0_141 = arith.constant 0 : index
    %c0_142 = arith.constant 0 : index
    %129 = vector.load %arg3[%c0_139, %c3_140, %c0_141, %c0_142] : memref<1x4x2x128xf32, #tpu.memory_space<vmem>>, vector<1x1x2x128xf32>
    %130 = vector.shape_cast %129 : vector<1x1x2x128xf32> to vector<2x128xf32>
    %c0_143 = arith.constant 0 : index
    %c0_144 = arith.constant 0 : index
    %131 = vector.load %arg5[%c0_143, %c0_144] : memref<2x128xf32, #tpu.memory_space<vmem>>, vector<2x128xf32>
    %132 = arith.subf %128, %131 : vector<2x128xf32>
    %133 = math.exp %132 : vector<2x128xf32>
    %c0_145 = arith.constant 0 : index
    %c0_146 = arith.constant 0 : index
    %134 = vector.load %arg6[%c0_145, %c0_146] : memref<2x128xf32, #tpu.memory_space<vmem>>, vector<2x128xf32>
    %135 = arith.mulf %133, %134 : vector<2x128xf32>
    %136 = arith.mulf %135, %130 : vector<2x128xf32>
    %137 = arith.mulf %135, %135 : vector<2x128xf32>
    %138 = arith.mulf %130, %130 : vector<2x128xf32>
    %139 = arith.addf %137, %138 : vector<2x128xf32>
    %c3_147 = arith.constant 3 : index
    %c0_148 = arith.constant 0 : index
    %140 = vector.load %arg7[%c3_147, %c0_148] : memref<4x128xf32, #tpu.memory_space<vmem>>, vector<1x128xf32>
    %cst_149 = arith.constant dense<0.000000e+00> : vector<128xf32>
    %141 = vector.multi_reduction <add>, %136, %cst_149 [0] : vector<2x128xf32> to vector<128xf32>
    %142 = vector.shape_cast %141 : vector<128xf32> to vector<1x128xf32>
    %143 = arith.addf %140, %142 : vector<1x128xf32>
    %c3_150 = arith.constant 3 : index
    %c0_151 = arith.constant 0 : index
    %144 = vector.load %arg7[%c3_150, %c0_151] : memref<4x128xf32, #tpu.memory_space<vmem>>, vector<1x128xf32>
    tpu.vector_store %arg7[%c3_150, %c0_151], %143 {strides = array<i32>} : memref<4x128xf32, #tpu.memory_space<vmem>>, vector<1x128xf32>,
    %c3_152 = arith.constant 3 : index
    %c0_153 = arith.constant 0 : index
    %145 = vector.load %arg8[%c3_152, %c0_153] : memref<4x128xf32, #tpu.memory_space<vmem>>, vector<1x128xf32>
    %cst_154 = arith.constant dense<0.000000e+00> : vector<128xf32>
    %146 = vector.multi_reduction <add>, %139, %cst_154 [0] : vector<2x128xf32> to vector<128xf32>
    %147 = vector.shape_cast %146 : vector<128xf32> to vector<1x128xf32>
    %148 = arith.addf %145, %147 : vector<1x128xf32>
    %c3_155 = arith.constant 3 : index
    %c0_156 = arith.constant 0 : index
    %149 = vector.load %arg8[%c3_155, %c0_156] : memref<4x128xf32, #tpu.memory_space<vmem>>, vector<1x128xf32>
    tpu.vector_store %arg8[%c3_155, %c0_156], %148 {strides = array<i32>} : memref<4x128xf32, #tpu.memory_space<vmem>>, vector<1x128xf32>,
    %c0_i32_157 = arith.constant 0 : i32
    %150 = arith.cmpi eq, %arg1, %c0_i32_157 : i32
    %151 = arith.extui %150 : i1 to i32
    %c0_i32_158 = arith.constant 0 : i32
    %152 = arith.cmpi ne, %151, %c0_i32_158 : i32
    scf.if %152 {
      %c0_159 = arith.constant 0 : index
      %c0_160 = arith.constant 0 : index
      %153 = vector.load %arg7[%c0_159, %c0_160] : memref<4x128xf32, #tpu.memory_space<vmem>>, vector<4x128xf32>
      %cst_161 = arith.constant dense<0.000000e+00> : vector<4xf32>
      %154 = vector.multi_reduction <add>, %153, %cst_161 [1] : vector<4x128xf32> to vector<4xf32>
      %155 = vector.shape_cast %154 : vector<4xf32> to vector<4x1xf32>
      %c0_162 = arith.constant 0 : index
      %c0_163 = arith.constant 0 : index
      %156 = vector.load %arg8[%c0_162, %c0_163] : memref<4x128xf32, #tpu.memory_space<vmem>>, vector<4x128xf32>
      %cst_164 = arith.constant dense<0.000000e+00> : vector<4xf32>
      %157 = vector.multi_reduction <add>, %156, %cst_164 [1] : vector<4x128xf32> to vector<4xf32>
      %158 = vector.shape_cast %157 : vector<4xf32> to vector<4x1xf32>
      %cst_165 = arith.constant 2.000000e+00 : f32
      %159 = vector.broadcast %cst_165 : f32 to vector<4x1xf32>
      %160 = arith.mulf %159, %155 : vector<4x1xf32>
      %cst_166 = arith.constant 9.99999997E-7 : f32
      %161 = vector.broadcast %cst_166 : f32 to vector<4x1xf32>
      %162 = arith.addf %160, %161 : vector<4x1xf32>
      %cst_167 = arith.constant 9.99999997E-7 : f32
      %163 = vector.broadcast %cst_167 : f32 to vector<4x1xf32>
      %164 = arith.addf %158, %163 : vector<4x1xf32>
      %165 = arith.divf %162, %164 : vector<4x1xf32>
      %cst_168 = arith.constant 1.000000e+00 : f32
      %166 = vector.broadcast %cst_168 : f32 to vector<4x1xf32>
      %167 = arith.subf %166, %165 : vector<4x1xf32>
      %168 = vector.shape_cast %167 : vector<4x1xf32> to vector<1x4x1xf32>
      %c0_169 = arith.constant 0 : index
      %c0_170 = arith.constant 0 : index
      %c0_171 = arith.constant 0 : index
      %169 = vector.load %arg4[%c0_169, %c0_170, %c0_171] : memref<1x4x1xf32, #tpu.memory_space<vmem>>, vector<1x4x1xf32>
      tpu.vector_store %arg4[%c0_169, %c0_170, %c0_171], %168 {strides = array<i32>} : memref<1x4x1xf32, #tpu.memory_space<vmem>>, vector<1x4x1xf32>,
    } else {
    }
    return
  }
  func.func @transform_0(%arg0: i32, %arg1: i32) -> (i32, i32, i32, i32) {
    %c0_i32 = arith.constant 0 : i32
    %c0_i32_0 = arith.constant 0 : i32
    %c0_i32_1 = arith.constant 0 : i32
    return %arg0, %c0_i32, %arg1, %c0_i32_0 : i32, i32, i32, i32
  }
  func.func @transform_1(%arg0: i32, %arg1: i32) -> (i32, i32, i32, i32) {
    %c0_i32 = arith.constant 0 : i32
    %c0_i32_0 = arith.constant 0 : i32
    %c0_i32_1 = arith.constant 0 : i32
    return %arg0, %c0_i32, %arg1, %c0_i32_0 : i32, i32, i32, i32
  }
  func.func @transform_2(%arg0: i32, %arg1: i32) -> (i32, i32, i32) {
    %c0_i32 = arith.constant 0 : i32
    %c0_i32_0 = arith.constant 0 : i32
    %c0_i32_1 = arith.constant 0 : i32
    return %arg0, %c0_i32, %c0_i32_0 : i32, i32, i32
  }
}

</mosaic_0001>

<bundles_post_ra>
// kernel: tpu_custom_call.1
= control target key start
LH: loop header
LB: loop body
LE: loop exit
PB: predicated region body
PF: predicated region fallthrough
CT: control target
= control target key end

     0   :  { %7 = vsyncpa [#allocation7], 0  ;;  %s992_s0 = inlined_call_operand.hbm [shape: f32[2,4,2,128], index: 0, kind: input, shape index: {}]   ;;  %s993_s1 = inlined_call_operand.hbm [shape: f32[2,4,2,128], index: 1, kind: input, shape index: {}]   ;;  %s994_s2 = inlined_call_operand.vmem [shape: f32[2,4,1], index: 2, kind: output, shape index: {}]  }
   0x1   :  { %9 = vsyncpa [#allocation7 + $0x1], 0 }
   0x2   :  { %10 = vsyncpa [#allocation9], 0 }
   0x3   :  { %12 = vsyncpa [#allocation9 + $0x1], 0  ;;  %s780_s9 = smov 0   ;;  %s782_s10 = smov 0  }
   0x4   :  { %s784_s11 = smov 0   ;;  %s786_s12 = smov 0  }
   0x5   :  { %s788_s13 = smov 0   ;;  %s790_s14 = smov 0  }
   0x6 LB: > { %s531_s15 = sadd.s32 4294967295, %s758_s14   ;;  %s30_s16 = sadd.s32 1, %s754_s13  ;;  %s758_s14 = sphi %s790_s14, %s18_s14   ;;  %s754_s13 = sphi %s788_s13, %s1005_s13   ;;  %s750_s12 = sphi %s786_s12, %s1004_s12   ;;  %s746_s11 = sphi %s784_s11, %s1003_s11   ;;  %s742_s10 = sphi %s782_s10, %s1002_s10   ;;  %s738_s9 = sphi %s780_s9, %s1001_s9  }
   0x7   : > { %p32_p0 = scmp.ge.s32.totalorder %s30_s16, 2  ;;  %s39_s17 = sadd.s32 1, %s746_s11 }
   0x8   : > { %p46_p1 = scmp.ne.s32.totalorder %s746_s11, %s742_s10  ;;  %p47_p2 = scmp.eq.s32.totalorder %s758_s14, 0 }
   0x9   : > { %s1007_s16 = smov (%p32_p0, %s30_s16), 0  ;;  %p52_p4 = scmp.ne.s32.totalorder %s742_s10, %s738_s9 }
   0xa   : > { %p816_p3 = por %p47_p2, %p46_p1  ;;  %s34_s19 = ssub.s32 %s754_s13, %s1007_s16 }
   0xb   : > { %p53_p5 = scmp.eq.s32.totalorder %s531_s15, 0  ;;  %p37_p6 = scmp.eq.s32.totalorder %s34_s19, 0 }
   0xc   : > { %p572_p8 = scmp.lt.s32.totalorder %s758_s14, 2  ;;  %s832_s22 = sand.u32 1, %s746_s11  }
   0xd   : > { %p823_p7 = por %p53_p5, %p52_p4  ;;  %s559_s23 = sshll.u32 %s754_s13, 7 }
   0xe   : > { %s829_s21 = scalar_select %p37_p6, %s746_s11, %s39_s17  }
   0xf   : > { %s997_s20 = scalar_select %p823_p7, 1, 0 }
  0x10   : > { %s535_s24 = sshll.u32 %s832_s22, 3  ;;  %s841_s27 = scalar_lea.hbm %s992_s0, %s559_s23 }
  0x11   : > { %s134_s28 = scalar_lea.vmem [#allocation6], %s535_s24  ;;  %p847_p9 = pnand %p572_p8, %p816_p3 }
  0x12   : > { %s142_s29 = sshll.u32 %s134_s28, 4  ;;  %s131_s3 = scalar_lea.sflag [#allocation7], %s832_s22  ;;  %s851_s29 = int_to_ptr.vmem [resolvable:$true] %s142_s29 }
  0x13   : > { %s644_s4 = scalar_lea.hbm %s841_s27, 128  ;;  %p646_p11 = pneg %p847_p9 }
  0x14   : > { %p645_p10 = scmp.ne.s32.totalorder %s841_s27, %s644_s4  ;;  %s649_s7 = scalar_lea.hbm %s992_s0, 256 }
  0x15   : > { %p650_p0 = scmp.lt.u32.totalorder %s841_s27, %s992_s0  ;;  %p651_p1 = scmp.lt.u32.totalorder %s649_s7, %s644_s4 }
  0x16   : > { %p647_p12 = pnand %p646_p11, %p645_p10  ;;  %p653_p3 = scmp.lt.u32.totalorder %s644_s4, %s841_s27 }
  0x17   : > { %p652_p2 = por %p651_p1, %p650_p0 }
  0x18   : > { %p648_p13 = pneg %p647_p12 }
  0x19   : > { %p654_p4 = por %p653_p3, %p652_p2 }
  0x1b   : > { %p655_p5 = pnand %p654_p4, %p648_p13 }
  0x1d   : > { %658 = shalt.err (!%p655_p5)
}
  0x1e   : > { %s659_s15 = scalar_lea.vmem %s851_s29, 128  ;;  %s760_s17 = smov [#allocation6]  }
  0x1f   : > { %p660_p6 = scmp.ne.s32.totalorder %s851_s29, %s659_s15  ;;  %s664_s18 = sshll.u32 %s760_s17, 4  ;;  %s665_s18 = int_to_ptr.vmem [resolvable:$false] %s664_s18 }
  0x20   : > { %s666_s19 = scalar_lea.vmem %s665_s18, 256  ;;  %p667_p12 = scmp.lt.s32.totalorder %s851_s29, %s665_s18 }
  0x21   : > { %p662_p8 = pnand %p660_p6, %p646_p11  ;;  %p668_p0 = scmp.lt.s32.totalorder %s666_s19, %s659_s15 }
  0x23   : > { %p663_p10 = pneg %p662_p8  ;;  %p669_p1 = por %p668_p0, %p667_p12 }
  0x25   : > { %p670_p2 = pnand %p669_p1, %p663_p10 }
  0x27   : > { %673 = shalt.err (!%p670_p2)
}
  0x28   : > { %s761_s25 = smov 32   ;;  %s762_s26 = smov 2  }
  0x29   : > { %568 = dma.hbm_to_vmem [thread:$0]  (!%p847_p9), %s841_s27, 128, %s851_s29, %s131_s3, %s761_s25, %s761_s25, %s762_s26  }
  0x2a   : > { %p541_p13 = scmp.ge.s32.totalorder %s758_s14, 1  ;;  %p172_p3 = scmp.lt.s32.totalorder %s758_s14, 3 }
  0x2b   : > { %s895_s6 = scalar_lea.hbm %s993_s1, %s559_s23  ;;  %s156_s7 = scalar_lea.vmem [#allocation8], %s535_s24 }
  0x2c   : > { %p886_p4 = pnand %p541_p13, %p172_p3  ;;  %s164_s8 = sshll.u32 %s156_s7, 4  ;;  %s899_s8 = int_to_ptr.vmem [resolvable:$true] %s164_s8 }
  0x2d   : > { %s153_s27 = scalar_lea.sflag [#allocation9], %s832_s22  ;;  %s674_s29 = scalar_lea.hbm %s895_s6, 128 }
  0x2e   : > { %p675_p5 = scmp.ne.s32.totalorder %s895_s6, %s674_s29  ;;  %s679_s23 = scalar_lea.hbm %s993_s1, 256 }
  0x2f   : > { %p680_p10 = scmp.lt.u32.totalorder %s895_s6, %s993_s1  ;;  %p681_p12 = scmp.lt.u32.totalorder %s679_s23, %s674_s29 }
  0x30   : > { %p677_p6 = pnand %p675_p5, %p646_p11  ;;  %p683_p1 = scmp.lt.u32.totalorder %s674_s29, %s895_s6 }
  0x31   : > { %p682_p0 = por %p681_p12, %p680_p10 }
  0x32   : > { %p678_p8 = pneg %p677_p6 }
  0x33   : > { %p684_p2 = por %p683_p1, %p682_p0 }
  0x35   : > { %p685_p13 = pnand %p684_p2, %p678_p8 }
  0x37   : > { %688 = shalt.err (!%p685_p13)
}
  0x38   : > { %s689_s24 = scalar_lea.vmem %s899_s8, 128  ;;  %s763_s18 = smov [#allocation8]  }
  0x39   : > { %p690_p3 = scmp.ne.s32.totalorder %s899_s8, %s689_s24  ;;  %s694_s19 = sshll.u32 %s763_s18, 4  ;;  %s695_s19 = int_to_ptr.vmem [resolvable:$false] %s694_s19 }
  0x3a   : > { %s696_s4 = scalar_lea.vmem %s695_s19, 256  ;;  %p697_p7 = scmp.lt.s32.totalorder %s899_s8, %s695_s19 }
  0x3b   : > { %p692_p5 = pnand %p690_p3, %p646_p11  ;;  %p698_p10 = scmp.lt.s32.totalorder %s696_s4, %s689_s24 }
  0x3d   : > { %p693_p6 = pneg %p692_p5  ;;  %p699_p12 = por %p698_p10, %p697_p7 }
  0x3f   : > { %p700_p0 = pnand %p699_p12, %p693_p6 }
  0x41   : > { %703 = shalt.err (!%p700_p0)
}
  0x42   : > { %571 = dma.hbm_to_vmem [thread:$0]  (!%p847_p9), %s895_s6, 128, %s899_s8, %s153_s27, %s761_s25, %s761_s25, %s762_s26  }
  0x43   : > { %176 = sbr.rel (%p886_p4) target bundleno = 388 (0x184), region = 28  ;;  %s178_s5 = sand.u32 (!%p886_p4), 1, %s742_s10  }
  0x44   : > { %s542_s7 = sshll.u32 (!%p886_p4), %s178_s5, 3  ;;  %s179_s29 = scalar_lea.sflag (!%p886_p4), [#allocation7], %s178_s5 }
  0x45   : > { %s933_s3 = scalar_lea.vmem (!%p886_p4), [#allocation6], %s542_s7  ;;  %p1000_p7 = scmp.ne.s32.totalorder (!%p886_p4), %s997_s20, 0 }
  0x4a   : > { %729 = dma.done.wait (%p1000_p7), %s179_s29, 128  }
  0x4b   : > { %731 = vsyncadd (%p1000_p7), %s179_s29, 4294967168  ;;  %s188_s22 = scalar_lea.sflag [#allocation9], %s178_s5  ;;  %s939_s30 = scalar_lea.vmem [#allocation8], %s542_s7 }
  0x4c   : > { %733 = dma.done.wait (%p1000_p7), %s188_s22, 128  }
  0x4d   : > { %735 = vsyncadd (%p1000_p7), %s188_s22, 4294967168  ;;  %v764_v0 = vmov 0.0   ;;  %v226_v1 = vld [vmem:[%s933_s3] sm:$0x3]  ;;  %v545_v2 = vld [vmem:[%s933_s3 + $0x2] sm:$0x3] }
  0x4e   : > { %225 = vst [vmem:[#allocation5] sm:$0xf] %v764_v0  ;;  %224 = vst [vmem:[#allocation4] sm:$0xf] %v764_v0  ;;  %v546_v5 = vld [vmem:[%s933_s3 + $0x4] sm:$0x3] }
  0x4f   : > { %227 = vst [vmem:[#allocation2] sm:$0x3] %v226_v1  ;;  %v547_v8 = vld [vmem:[%s933_s3 + $0x6] sm:$0x3]  ;;  %v243_v11 = vld [vmem:[%s933_s3] sm:$0x3] }
  0x50   : > { %v548_v13 = vld [vmem:[%s933_s3 + $0x2] sm:$0x3]  ;;  %v549_v19 = vld [vmem:[%s933_s3 + $0x4] sm:$0x3]  ;;  %v550_v24 = vld [vmem:[%s933_s3 + $0x6] sm:$0x3] }
  0x51   : > { %v279_v38 = vld [vmem:[%s933_s3] sm:$0x3]  ;;  %v551_v40 = vld [vmem:[%s933_s3 + $0x2] sm:$0x3]  ;;  %v553_v42 = vld [vmem:[%s933_s3 + $0x4] sm:$0x3] }
  0x52   : > { %v555_v45 = vld [vmem:[%s933_s3 + $0x6] sm:$0x3]  ;;  %v280_v60 = vld [vmem:[%s939_s30] sm:$0x3]  ;;  %v552_v61 = vld [vmem:[%s939_s30 + $0x2] sm:$0x3] }
  0x53   : > { %v554_v63 = vld [vmem:[%s939_s30 + $0x4] sm:$0x3]  ;;  %v556_v1 = vld [vmem:[%s939_s30 + $0x6] sm:$0x3]  ;;  %vm292_vm0 = vcmask 1041408   ;;  %vm415_vm1 = vcmask 1043456  }
  0x54   : > { %p216_p9 = scmp.lt.s32.totalorder %s750_s12, 1  ;;  %vm429_vm2 = vcmask 3072  }
  0x56   : > { %v228_v3 = vld [vmem:[#allocation2] sm:$0x3]  ;;  %s1009_s12 = smov (!%p216_p9, %s750_s12), 1 }
  0x57   : > { %v231_v4 = vmax.f32 %v228_v3, %v545_v2  ;;  %v289_v3 = vmul.f32 %v280_v60, %v280_v60  ;;  %s544_s20 = sshll.u32 %s1009_s12, 2 }
  0x58   : > { %s219_s28 = scalar_lea.vmem %s994_s2, %s544_s20 }
  0x59   : > { %232 = vst [vmem:[#allocation2] sm:$0x3] %v231_v4 }
  0x60   : > { %v233_v6 = vld [vmem:[#allocation2] sm:$0x3] }
  0x61   : > { %v236_v7 = vmax.f32 %v233_v6, %v546_v5  ;;  %v323_v5 = vmul.f32 %v552_v61, %v552_v61 }
  0x63   : > { %237 = vst [vmem:[#allocation2] sm:$0x3] %v236_v7 }
  0x6a   : > { %v238_v9 = vld [vmem:[#allocation2] sm:$0x3] }
  0x6b   : > { %v241_v10 = vmax.f32 %v238_v9, %v547_v8 }
  0x6d   : > { %242 = vst [vmem:[#allocation2] sm:$0x3] %v241_v10  ;;  %v356_v10 = vmul.f32 %v554_v63, %v554_v63 }
  0x74   : > { %v244_v12 = vld [vmem:[#allocation2] sm:$0x3] }
  0x75   : > { %v251_v14 = vld [vmem:[#allocation2] sm:$0x3]  ;;  %v245_v15 = vsub.f32 %v243_v11, %v244_v12 }
  0x76   : > { %v252_v17 = vsub.f32 %v548_v13, %v251_v14  ;;  %v259_v20 = vld [vmem:[#allocation2] sm:$0x3]  ;;  %v389_v13 = vmul.f32 %v556_v1, %v556_v1 }
  0x77   : > { %v246_v16 = vmul.f32 1.442695, %v245_v15  ;;  %v260_v21 = vsub.f32 %v549_v19, %v259_v20  ;;  %v267_v25 = vld [vmem:[#allocation2] sm:$0x3] }
  0x78   : > { %v253_v18 = vmul.f32 1.442695, %v252_v17  ;;  %v268_v28 = vsub.f32 %v550_v24, %v267_v25  ;;  %v281_v39 = vld [vmem:[#allocation2] sm:$0x3] }
  0x79   : > { %624 = vpow2.f32 %v246_v16  ;;  %v261_v23 = vmul.f32 1.442695, %v260_v21  ;;  %v315_v41 = vld [vmem:[#allocation2] sm:$0x3]  ;;  %v282_v44 = vsub.f32 %v279_v38, %v281_v39 }
  0x7a   : > { %626 = vpow2.f32 %v253_v18  ;;  %v269_v30 = vmul.f32 1.442695, %v268_v28  ;;  %v348_v43 = vld [vmem:[#allocation2] sm:$0x3]  ;;  %v316_v47 = vsub.f32 %v551_v40, %v315_v41 }
  0x7b   : > { %628 = vpow2.f32 %v261_v23  ;;  %v381_v46 = vld [vmem:[#allocation2] sm:$0x3]  ;;  %v349_v48 = vsub.f32 %v553_v42, %v348_v43  ;;  %v283_v50 = vmul.f32 1.442695, %v282_v44 }
  0x7c   : > { %630 = vpow2.f32 %v269_v30  ;;  %v382_v49 = vsub.f32 %v555_v45, %v381_v46  ;;  %v317_v51 = vmul.f32 1.442695, %v316_v47 }
  0x7d   : > { %v350_v52 = vmul.f32 1.442695, %v349_v48 }
  0x7e   : > { %v383_v53 = vmul.f32 1.442695, %v382_v49 }
  0x83   : > { %v625_v22 = vpop.eup %624 }
  0x84   : > { %248 = vst [vmem:[#allocation3] sm:$0x3] %v625_v22  ;;  %v627_v26 = vpop.eup %626 }
  0x85   : > { %v629_v31 = vpop.eup %628 }
  0x86   : > { %v631_v34 = vpop.eup %630 }
  0x8b   : > { %v249_v27 = vld [vmem:[#allocation3] sm:$0x3] }
  0x8c   : > { %v255_v29 = vadd.f32 %v627_v26, %v249_v27 }
  0x8e   : > { %256 = vst [vmem:[#allocation3] sm:$0x3] %v255_v29 }
  0x95   : > { %v257_v32 = vld [vmem:[#allocation3] sm:$0x3] }
  0x96   : > { %v263_v33 = vadd.f32 %v629_v31, %v257_v32 }
  0x98   : > { %264 = vst [vmem:[#allocation3] sm:$0x3] %v263_v33 }
  0x9f   : > { %v265_v35 = vld [vmem:[#allocation3] sm:$0x3] }
  0xa0   : > { %v271_v36 = vadd.f32 %v631_v34, %v265_v35 }
  0xa2   : > { %272 = vst [vmem:[#allocation3] sm:$0x3] %v271_v36 }
  0xa9   : > { %v273_v37 = vld [vmem:[#allocation3] sm:$0x3] }
  0xaa   : > { %632 = vrcp.f32 %v273_v37 }
  0xab   : > { %634 = vpow2.f32 %v283_v50 }
  0xac   : > { %636 = vpow2.f32 %v317_v51 }
  0xad   : > { %638 = vpow2.f32 %v350_v52 }
  0xae   : > { %640 = vpow2.f32 %v383_v53 }
  0xb4   : > { %v633_v54 = vpop.eup %632 }
  0xb5   : > { %v275_v55 = vmul.f32 %v633_v54, %v273_v37  ;;  %v635_v58 = vpop.eup %634 }
  0xb6   : > { %v637_v59 = vpop.eup %636 }
  0xb7   : > { %v276_v56 = vsub.f32 2.0, %v275_v55  ;;  %v639_v62 = vpop.eup %638 }
  0xb8   : > { %v641_v0 = vpop.eup %640 }
  0xb9   : > { %v277_v57 = vmul.f32 %v633_v54, %v276_v56 }
  0xbb   : > { %278 = vst [vmem:[#allocation3] sm:$0x3] %v277_v57 }
  0xc2   : > { %v285_v2 = vld [vmem:[#allocation3] sm:$0x3] }
  0xc3   : > { %v319_v4 = vld [vmem:[#allocation3] sm:$0x3]  ;;  %v286_v7 = vmul.f32 %v635_v58, %v285_v2 }
  0xc4   : > { %v352_v6 = vld [vmem:[#allocation3] sm:$0x3]  ;;  %v320_v8 = vmul.f32 %v637_v59, %v319_v4 }
  0xc5   : > { %v353_v9 = vmul.f32 %v639_v62, %v352_v6  ;;  %v385_v11 = vld [vmem:[#allocation3] sm:$0x3]  ;;  %v288_v14 = vmul.f32 %v286_v7, %v286_v7  ;;  %v287_v17 = vmul.f32 %v286_v7, %v280_v60  ;;  %v302_v62 = vld [vmem:[#allocation5] sm:$0x1]  ;;  %v325_v7 = vld [vmem:[#allocation4 + $0x1] sm:$0x1] }
  0xc6   : > { %v386_v12 = vmul.f32 %v641_v0, %v385_v11  ;;  %v322_v15 = vmul.f32 %v320_v8, %v320_v8  ;;  %v321_v19 = vmul.f32 %v552_v61, %v320_v8  ;;  %v291_v0 = vld [vmem:[#allocation4] sm:$0x1] }
  0xc7   : > { %v355_v16 = vmul.f32 %v353_v9, %v353_v9  ;;  %v354_v20 = vmul.f32 %v554_v63, %v353_v9  ;;  %v290_v22 = vadd.f32 %v289_v3, %v288_v14  ;;  %v293_v25 = vsel %vm292_vm0, %v287_v17, 0.0  ;;  %v335_v9 = vld [vmem:[#allocation5 + $0x1] sm:$0x1] }
  0xc8   : > { %v388_v18 = vmul.f32 %v386_v12, %v386_v12  ;;  %v387_v21 = vmul.f32 %v556_v1, %v386_v12  ;;  %v324_v23 = vadd.f32 %v323_v5, %v322_v15  ;;  %v294_v27 = vrot.slane %v293_v25, 4 }
  0xc9   : > { %v357_v24 = vadd.f32 %v356_v10, %v355_v16  ;;  %v326_v28 = vsel %vm292_vm0, %v321_v19, 0.0  ;;  %v359_v29 = vsel %vm292_vm0, %v354_v20, 0.0  ;;  %v303_v30 = vsel %vm292_vm0, %v290_v22, 0.0  ;;  %v368_v10 = vld [vmem:[#allocation5 + $0x2] sm:$0x1] }
  0xca   : > { %v390_v26 = vadd.f32 %v389_v13, %v388_v18  ;;  %v336_v31 = vsel %vm292_vm0, %v324_v23, 0.0  ;;  %v327_v33 = vrot.slane %v326_v28, 4  ;;  %v304_v34 = vrot.slane %v303_v30, 4  ;;  %v401_v18 = vld [vmem:[#allocation5 + $0x3] sm:$0x1] }
  0xcb   : > { %v369_v32 = vsel %vm292_vm0, %v357_v24, 0.0  ;;  %v337_v35 = vrot.slane %v336_v31, 4  ;;  %v295_v39 = vadd.f32 %v294_v27, %v293_v25  ;;  %v360_v41 = vrot.slane %v359_v29, 4  ;;  %v358_v19 = vld [vmem:[#allocation4 + $0x2] sm:$0x1] }
  0xcc   : > { %v370_v36 = vrot.slane %v369_v32, 4  ;;  %v402_v37 = vsel %vm292_vm0, %v390_v26, 0.0  ;;  %v328_v40 = vadd.f32 %v327_v33, %v326_v28  ;;  %v305_v42 = vadd.f32 %v304_v34, %v303_v30 }
  0xcd   : > { %v403_v38 = vrot.slane %v402_v37, 4  ;;  %v338_v43 = vadd.f32 %v337_v35, %v336_v31  ;;  %v392_v45 = vsel %vm292_vm0, %v387_v21, 0.0  ;;  %v296_v47 = vrot.slane %v295_v39, 2  ;;  %v391_v31 = vld [vmem:[#allocation4 + $0x3] sm:$0x1] }
  0xce   : > { %v371_v44 = vadd.f32 %v370_v36, %v369_v32  ;;  %v329_v48 = vrot.slane %v328_v40, 2  ;;  %v361_v49 = vadd.f32 %v360_v41, %v359_v29  ;;  %v306_v50 = vrot.slane %v305_v42, 2 }
  0xcf   : > { %v404_v46 = vadd.f32 %v403_v38, %v402_v37  ;;  %v339_v51 = vrot.slane %v338_v43, 2  ;;  %v393_v53 = vrot.slane %v392_v45, 4  ;;  %v297_v55 = vadd.f32 %v296_v47, %v295_v39 }
  0xd0   : > { %v372_v52 = vrot.slane %v371_v44, 2  ;;  %v330_v56 = vadd.f32 %v329_v48, %v328_v40  ;;  %v362_v57 = vrot.slane %v361_v49, 2  ;;  %v307_v58 = vadd.f32 %v306_v50, %v305_v42 }
  0xd1   : > { %v405_v54 = vrot.slane %v404_v46, 2  ;;  %v340_v59 = vadd.f32 %v339_v51, %v338_v43  ;;  %v394_v61 = vadd.f32 %v393_v53, %v392_v45  ;;  %v298_v1 = vrot.slane %v297_v55, 1 }
  0xd2   : > { %v373_v60 = vadd.f32 %v372_v52, %v371_v44  ;;  %v331_v2 = vrot.slane %v330_v56, 1  ;;  %v363_v3 = vadd.f32 %v362_v57, %v361_v49  ;;  %v308_v4 = vrot.slane %v307_v58, 1 }
  0xd3   : > { %v406_v63 = vadd.f32 %v405_v54, %v404_v46  ;;  %v341_v5 = vrot.slane %v340_v59, 1  ;;  %v395_v8 = vrot.slane %v394_v61, 2  ;;  %v299_v12 = vadd.f32 %v298_v1, %v297_v55 }
  0xd4   : > { %v374_v6 = vrot.slane %v373_v60, 1  ;;  %v332_v13 = vadd.f32 %v331_v2, %v330_v56  ;;  %v364_v14 = vrot.slane %v363_v3, 1  ;;  %v309_v15 = vadd.f32 %v308_v4, %v307_v58 }
  0xd5   : > { %v407_v11 = vrot.slane %v406_v63, 1  ;;  %v342_v16 = vadd.f32 %v341_v5, %v340_v59  ;;  %v396_v20 = vadd.f32 %v395_v8, %v394_v61  ;;  %v300_v22 = vadd.f32 %v299_v12, %v291_v0 }
  0xd6   : > { %v375_v17 = vadd.f32 %v374_v6, %v373_v60  ;;  %v333_v23 = vadd.f32 %v332_v13, %v325_v7  ;;  %v365_v24 = vadd.f32 %v364_v14, %v363_v3  ;;  %v310_v25 = vadd.f32 %v309_v15, %v302_v62 }
  0xd7   : > { %v408_v21 = vadd.f32 %v407_v11, %v406_v63  ;;  %v343_v26 = vadd.f32 %v342_v16, %v335_v9  ;;  %v397_v28 = vrot.slane %v396_v20, 1  ;;  %301 = vst [vmem:[#allocation4] sm:$0x1] %v300_v22 }
  0xd8   : > { %v376_v27 = vadd.f32 %v375_v17, %v368_v10  ;;  %334 = vst [vmem:[#allocation4 + $0x1] sm:$0x1] %v333_v23  ;;  %v366_v30 = vadd.f32 %v365_v24, %v358_v19  ;;  %311 = vst [vmem:[#allocation5] sm:$0x1] %v310_v25 }
  0xd9   : > { %v409_v29 = vadd.f32 %v408_v21, %v401_v18  ;;  %344 = vst [vmem:[#allocation5 + $0x1] sm:$0x1] %v343_v26  ;;  %v398_v32 = vadd.f32 %v397_v28, %v396_v20 }
  0xda   : > { %377 = vst [vmem:[#allocation5 + $0x2] sm:$0x1] %v376_v27  ;;  %367 = vst [vmem:[#allocation4 + $0x2] sm:$0x1] %v366_v30 }
  0xdb   : > { %410 = vst [vmem:[#allocation5 + $0x3] sm:$0x1] %v409_v29  ;;  %v399_v33 = vadd.f32 %v398_v32, %v391_v31 }
  0xdd   : > { %400 = vst [vmem:[#allocation4 + $0x3] sm:$0x1] %v399_v33 }
  0xe2   : > { %v419_v34 = vld [vmem:[#allocation5] sm:$0xf] }
  0xe3   : > { %v420_v35 = vsel %vm415_vm1, %v419_v34, 0.0 }
  0xe4   : > { %421 = vadd.xlane.f32.xlu0 %v420_v35  ;;  %v414_v36 = vld [vmem:[#allocation4] sm:$0xf] }
  0xe5   : > { %v416_v37 = vsel %vm415_vm1, %v414_v36, 0.0 }
  0xe8   : > { %417 = vadd.xlane.f32.xlu0 %v416_v37 }
 0x171   : > { %v422_v38 = vpop.xlane.xlu0 %421 }
 0x172   : > { %v425_v39 = vadd.f32 1e-06, %v422_v38 }
 0x174   : > { %642 = vrcp.f32 %v425_v39 }
 0x175   : > { %v418_v40 = vpop.xlane.xlu0 %417 }
 0x176   : > { %v423_v41 = vmul.f32 2.0, %v418_v40 }
 0x178   : > { %v424_v42 = vadd.f32 1e-06, %v423_v41 }
 0x17e   : > { %v643_v43 = vpop.eup %642 }
 0x17f   : > { %v427_v44 = vmul.f32 %v643_v43, %v424_v42 }
 0x181   : > { %v428_v45 = vsub.f32 1.0, %v427_v44 }
 0x183   : > { %430 = vst.msk [vmem:[%s219_s28] sm:$0xf] %vm429_vm2, %v428_v45 }
 0x184 PF: > { %s18_s14 = sadd.s32 1, %s758_s14   ;;  %s1001_s9 = smov %s742_s10 }
 0x185   : > { %p15_p11 = scmp.ge.s32.totalorder %s18_s14, 4   ;;  %s1002_s10 = smov %s746_s11 }
 0x186   : > { %s1003_s11 = smov %s829_s21  ;;  %s1004_s12 = smov %s754_s13 }
 0x187   : > { %s1005_s13 = smov %s1007_s16  ;;  %17 = sbr.rel (!%p15_p11) target bundleno = 6 (0x6), region = 95 }
 0x18e   :  { %450 = vsyncpa [#allocation7], 1 }
 0x18f   :  { %452 = vsyncpa [#allocation7 + $0x1], 1 }
 0x190   :  { %453 = vsyncpa [#allocation9], 1 }
 0x191   :  { %455 = vsyncpa [#allocation9 + $0x1], 1 }

</bundles_post_ra>
